<compile_context>
chip_gen: v5e
topology: v5e:2x2
jax: 0.10.0
libtpu: 0.0.40
codegen_flags: <defaults>
</compile_context>

<pallas_src>
import functools

import jax
import jax.numpy as jnp
from jax.experimental import pallas as pl
from jax.experimental.pallas import tpu as pltpu


# Action counts up to this size use a tiny in-kernel upper-triangular matmul
# for the inclusive cumsum (guaranteed lowering, negligible MXU cost). Larger
# action spaces use the log-step XLU roll scan to avoid O(A^2) VMEM / FLOPs.
_MATMUL_SCAN_MAX_A = 128


def _inclusive_cumsum_lanes(x, n):
    """Hillis-Steele inclusive scan along the last (lane) axis via XLU rolls."""
    lane = jax.lax.broadcasted_iota(jnp.int32, x.shape, x.ndim - 1)
    shift = 1
    while shift < n:
        shifted = pltpu.roll(x, shift=shift, axis=-1)  # shifted[j] = x[j - shift]
        x = x + jnp.where(lane >= shift, shifted, 0.0)
        shift *= 2
    return x


def _softmax_body_kernel(T, num_actions, x_ref, u_ref, act_ref):
    # Temperature scaling + numerically stable exponentials over the action axis.
    logits = x_ref[...].astype(jnp.float32) * T
    m = jnp.max(logits, axis=-1, keepdims=True)
    e = jnp.exp(logits - m)                       # unnormalized probabilities
    denom = jnp.sum(e, axis=-1, keepdims=True)    # softmax denominator

    # Inclusive cumulative sum of the unnormalized probs along the action axis.
    if num_actions <= _MATMUL_SCAN_MAX_A:
        # Build the (A, A) upper-triangular ones matrix in-kernel (no DMA'd
        # constant, no extra input stream); (TB, A) x (A, A) at A <= 128 is a
        # negligible fraction of the MXU.
        row = jax.lax.broadcasted_iota(jnp.int32, (num_actions, num_actions), 0)
        col = jax.lax.broadcasted_iota(jnp.int32, (num_actions, num_actions), 1)
        tri = (row <= col).astype(jnp.float32)
        cum = jnp.dot(e, tri, preferred_element_type=jnp.float32)
    else:
        cum = _inclusive_cumsum_lanes(e, num_actions)

    # Divide-free inverse-CDF categorical sampling:
    #   action = #{ j : cum_j < u * denom }  (== #{ j : cum_j / denom < u })
    thresh = u_ref[...] * denom                   # (TB, 1), broadcasts over A
    action = jnp.sum((cum < thresh).astype(jnp.int32), axis=-1, keepdims=True)

    # Clamp the fp edge case where u exceeds the last cumulative value.
    act_ref[...] = jnp.minimum(action, num_actions - 1)


def _round_up(x, m):
    return ((x + m - 1) // m) * m


def softmax_body(outputs, T, key):
    """Pallas equivalent of SoftmaxBody(T).forward(outputs).

    outputs: (B, A) float (f32 or bf16) Q-values / logits.
    Returns: (B, 1) int32 sampled actions.
    """
    B, A = outputs.shape

    # Batch tile sized from the data: target ~2 MiB of logits per block so the
    # streaming kernel sits near the HBM roofline (not grid-overhead bound),
    # while total VMEM (double-buffered inputs + f32 temporaries) stays well
    # under the 32 MiB limit below on every TPU generation.
    itemsize = jnp.dtype(outputs.dtype).itemsize
    target_block_bytes = 2 * 1024 * 1024
    tb = max(8, (target_block_bytes // (A * itemsize)) // 8 * 8)
    tb = min(tb, _round_up(B, 8))
    # Prefer >= 2 grid steps when B allows it so v7x can split the batch across
    # both TensorCores (costs only ~0.35 us extra on single-TC v5e/v6e).
    if B >= 16 and pl.cdiv(B, tb) < 2:
        tb = _round_up(pl.cdiv(B, 2), 8)

    grid = (pl.cdiv(B, tb),)

    # One uniform in [0, 1) per row — independent across the batch.
    u = jax.random.uniform(key, (B, 1), dtype=jnp.float32)

    kernel = functools.partial(_softmax_body_kernel, float(T), A)
    actions = pl.pallas_call(
        kernel,
        out_shape=jax.ShapeDtypeStruct((B, 1), jnp.int32),
        grid=grid,
        in_specs=[
            pl.BlockSpec((tb, A), lambda i: (i, 0)),   # logits tile (ragged tail handled by Pallas)
            pl.BlockSpec((tb, 1), lambda i: (i, 0)),   # per-row uniforms
        ],
        out_specs=pl.BlockSpec((tb, 1), lambda i: (i, 0)),
        compiler_params=pltpu.CompilerParams(
            dimension_semantics=("parallel",),
            vmem_limit_bytes=32 * 1024 * 1024,
        ),
    )(outputs, u)

    return actions


if __name__ == "__main__":
    key = jax.random.PRNGKey(0)
    k_logits, k_sample = jax.random.split(key)

    B, A = 8, 16                     # batch of 8 states, 16 possible actions
    outputs = jax.random.normal(k_logits, (B, A), dtype=jnp.float32)
    T = 7.0                          # temperature (module __init__ arg)

    actions = softmax_body(outputs, T, k_sample)
    actions = jax.block_until_ready(actions)

    assert actions.shape == (B, 1)
    assert actions.dtype == jnp.int32
    assert bool(jnp.all(actions >= 0)) and bool(jnp.all(actions < A))
    print("KERNEL_OK")
</pallas_src>

<mosaic_0001>
module attributes {stable_mosaic.version = 11 : i64} {
  func.func @_softmax_body_kernel(%arg0: i32, %arg1: memref<8x16xf32, #tpu.memory_space<vmem>>, %arg2: memref<8x1xf32, #tpu.memory_space<vmem>>, %arg3: memref<8x1xi32, #tpu.memory_space<vmem>>) attributes {dimension_semantics = [#tpu.dimension_semantics<parallel>], iteration_bounds = array<i64: 1>, scalar_prefetch = 0 : i64, scratch_operands = 0 : i64, tpu.core_type = #tpu.core_type<tc>, window_params = [{transform_indices = @transform_0, window_bounds = array<i64: 8, 16>}, {transform_indices = @transform_1, window_bounds = array<i64: 8, 1>}, {transform_indices = @transform_2, window_bounds = array<i64: 8, 1>}]} {
    %c0 = arith.constant 0 : index
    %c0_0 = arith.constant 0 : index
    %0 = vector.load %arg1[%c0, %c0_0] : memref<8x16xf32, #tpu.memory_space<vmem>>, vector<8x16xf32>
    %cst = arith.constant 7.000000e+00 : f32
    %1 = vector.broadcast %cst : f32 to vector<8x16xf32>
    %2 = arith.mulf %0, %1 : vector<8x16xf32>
    %cst_1 = arith.constant dense<0xFF800000> : vector<8xf32>
    %3 = vector.multi_reduction <maximumf>, %2, %cst_1 [1] : vector<8x16xf32> to vector<8xf32>
    %4 = vector.shape_cast %3 : vector<8xf32> to vector<8x1xf32>
    %5 = vector.broadcast %4 : vector<8x1xf32> to vector<8x16xf32>
    %6 = arith.subf %2, %5 : vector<8x16xf32>
    %7 = math.exp %6 : vector<8x16xf32>
    %cst_2 = arith.constant dense<0.000000e+00> : vector<8xf32>
    %8 = vector.multi_reduction <add>, %7, %cst_2 [1] : vector<8x16xf32> to vector<8xf32>
    %9 = vector.shape_cast %8 : vector<8xf32> to vector<8x1xf32>
    %10 = tpu.iota {dimensions = array<i32: 0>} : vector<16x16xi32>
    %11 = tpu.iota {dimensions = array<i32: 1>} : vector<16x16xi32>
    %12 = arith.cmpi sle, %10, %11 : vector<16x16xi32>
    %13 = arith.extui %12 : vector<16x16xi1> to vector<16x16xi32>
    %14 = arith.sitofp %13 : vector<16x16xi32> to vector<16x16xf32>
    %cst_3 = arith.constant dense<0.000000e+00> : vector<8x16xf32>
    %15 = tpu.matmul %7, %14, %cst_3 {dimension_numbers = #tpu.dot_dimension_numbers<[1], [0], [0], [1], [0, 0, 1, 1], [], []>} : vector<8x16xf32>, vector<16x16xf32>, vector<8x16xf32> -> vector<8x16xf32>
    %c0_4 = arith.constant 0 : index
    %c0_5 = arith.constant 0 : index
    %16 = vector.load %arg2[%c0_4, %c0_5] : memref<8x1xf32, #tpu.memory_space<vmem>>, vector<8x1xf32>
    %17 = arith.mulf %16, %9 : vector<8x1xf32>
    %18 = vector.broadcast %17 : vector<8x1xf32> to vector<8x16xf32>
    %19 = arith.cmpf olt, %15, %18 : vector<8x16xf32>
    %20 = arith.extui %19 : vector<8x16xi1> to vector<8x16xi32>
    %cst_6 = arith.constant dense<0> : vector<8xi32>
    %21 = vector.multi_reduction <add>, %20, %cst_6 [1] : vector<8x16xi32> to vector<8xi32>
    %22 = vector.shape_cast %21 : vector<8xi32> to vector<8x1xi32>
    %c15_i32 = arith.constant 15 : i32
    %23 = vector.broadcast %c15_i32 : i32 to vector<8x1xi32>
    %24 = arith.minsi %22, %23 : vector<8x1xi32>
    %c0_7 = arith.constant 0 : index
    %c0_8 = arith.constant 0 : index
    %25 = vector.load %arg3[%c0_7, %c0_8] : memref<8x1xi32, #tpu.memory_space<vmem>>, vector<8x1xi32>
    tpu.vector_store %arg3[%c0_7, %c0_8], %24 {strides = array<i32>} : memref<8x1xi32, #tpu.memory_space<vmem>>, vector<8x1xi32>,
    return
  }
  func.func @transform_0(%arg0: i32) -> (i32, i32) {
    %c0_i32 = arith.constant 0 : i32
    %c0_i32_0 = arith.constant 0 : i32
    return %arg0, %c0_i32 : i32, i32
  }
  func.func @transform_1(%arg0: i32) -> (i32, i32) {
    %c0_i32 = arith.constant 0 : i32
    %c0_i32_0 = arith.constant 0 : i32
    return %arg0, %c0_i32 : i32, i32
  }
  func.func @transform_2(%arg0: i32) -> (i32, i32) {
    %c0_i32 = arith.constant 0 : i32
    %c0_i32_0 = arith.constant 0 : i32
    return %arg0, %c0_i32 : i32, i32
  }
}

</mosaic_0001>

<bundles_post_ra>
// kernel: tpu_custom_call.1
= control target key start
LH: loop header
LB: loop body
LE: loop exit
PB: predicated region body
PF: predicated region fallthrough
CT: control target
= control target key end

     0   :  { %vm13_vm0 = vcmask 130048   ;;  %v23_v3 = vlaneseq  ;;  %v98_v7 = vmov 1.0   ;;  %v99_v13 = vmov 0   ;;  %s128_s0 = inlined_call_operand.vmem [shape: f32[8,16], index: 0, kind: input, shape index: {}]   ;;  %s129_s1 = inlined_call_operand.vmem [shape: f32[8,1], index: 1, kind: input, shape index: {}]   ;;  %s130_s2 = inlined_call_operand.vmem [shape: s32[8,1], index: 2, kind: output, shape index: {}]  }
   0x1   :  { %v11_v0 = vld [vmem:[%s128_s0] sm:$0xff]  ;;  %94 = vset.pattern.permute.xlu1 %v99_v13  ;;  %95 = vset.pattern.permute.xlu0 %v99_v13  ;;  %vm81_vm4 = vcmask 7168  }
   0x2   :  { %v12_v1 = vmul.f32 7.0, %v11_v0  ;;  %v24_v4 = vshrl.u32 %v23_v3, 7  ;;  %v27_v5 = vand.u32 127, %v23_v3  ;;  %v57_v14 = vld [vmem:[%s129_s1] sm:$0xff] }
   0x4   :  { %v14_v2 = vsel %vm13_vm0, %v12_v1, -inf  ;;  %v25_v6 = vadd.s32 8, %v24_v4  ;;  %vm28_vm2 = vcmp.le.s32.totalorder %v24_v4, %v27_v5 }
   0x5   :  { %15 = vmax.xlane.f32.xlu0 %v14_v2 }
   0x6   :  { %vm29_vm1 = vcmp.le.s32.totalorder %v25_v6, %v27_v5 }
   0x7   :  { %89 = vmatpush.msk.msra.mxu0 %vm29_vm1, %v98_v7 }
   0x9   :  { %90 = vmatpush.msk.msra.mxu0 %vm28_vm2, %v98_v7 }
  0x78   :  { %v16_v8 = vpop.xlane.xlu0 %15 }
  0x79   :  { %v17_v9 = vsub.f32 %v12_v1, %v16_v8 }
  0x7b   :  { %v18_v10 = vmul.f32 1.442695, %v17_v9 }
  0x7d   :  { %96 = vpow2.f32 %v18_v10 }
  0x83   :  { %v97_v11 = vpop.eup %96 }
  0x84   :  { %91 = vmatmul.msk.f32.vlgmr.msra.gmra.mxu0 %vm13_vm0, %v97_v11  ;;  %v20_v12 = vsel %vm13_vm0, %v97_v11, 0.0 }
  0x85   :  { %21 = vadd.xlane.f32.xlu0 %v20_v12 }
  0xf8   :  { %v22_v15 = vpop.xlane.xlu0 %21 }
  0xf9   :  { %v58_v16 = vmul.f32 %v57_v14, %v22_v15 }
  0xfb   :  { %61 = vperm.xlu1 %94, %v58_v16  }
 0x101   :  { %v54_v17 = vpop.f32.mrf.mxu0 }
 0x16d   :  { %v62_v18 = vpop.permute.xlu1 %61 }
 0x16e   :  { %vm64_vm3 = vcmp.lt.f32.partialorder %v54_v17, %v62_v18 }
 0x16f   :  { %v65_v19 = vsel %vm64_vm3, 1, %v99_v13 }
 0x170   :  { %v66_v20 = vsel %vm13_vm0, %v65_v19, 0 }
 0x171   :  { %v68_v21 = vshrl.u32 %v66_v20, 16  ;;  %v67_v22 = vand.u32 65535, %v66_v20 }
 0x173   :  { %v70_v23 = vcvt.s32.f32 %v68_v21  ;;  %v69_v24 = vcvt.s32.f32 %v67_v22 }
 0x175   :  { %73 = vadd.xlane.f32.xlu1 %v70_v23  ;;  %71 = vadd.xlane.f32.xlu2 %v69_v24 }
 0x1e8   :  { %v74_v25 = vpop.xlane.xlu1 %73  ;;  %v72_v26 = vpop.xlane.xlu2 %71 }
 0x1e9   :  { %v76_v27 = vcvt.f32.s32 %v74_v25  ;;  %v75_v29 = vcvt.f32.s32 %v72_v26 }
 0x1eb   :  { %v77_v28 = vshll.u32 %v76_v27, 16 }
 0x1ed   :  { %v78_v30 = vadd.s32 %v77_v28, %v75_v29 }
 0x1ef   :  { %vm79_vm5 = vcmp.lt.s32.totalorder %v78_v30, 15 }
 0x1f0   :  { %v80_v31 = vsel %vm79_vm5, %v78_v30, 15 }
 0x1f1   :  { %82 = vst.msk [vmem:[%s130_s2] sm:$0xff] %vm81_vm4, %v80_v31 }

</bundles_post_ra>
